<compile_context>
chip_gen: v6e
topology: v6e:2x2x1
jax: 0.10.0
libtpu: 0.0.40
codegen_flags: <defaults>
</compile_context>

<pallas_src>
import functools

import jax
import jax.numpy as jnp
from jax.experimental import pallas as pl


def _round_up(n, m):
    return ((n + m - 1) // m) * m


# ------------------------------------------------------------------ kernel --
def qnetwork_kernel(*refs, n_rows, n_actions):
    """Full QNetwork forward on a single VMEM-resident block (all padded).

    refs = (x_aug, w_aug_1, ..., w_aug_L, w_head_aug, out)
    Biases live inside the augmented weights; a carry-1 column rides through
    every hidden layer (relu(1)=1), so each layer is exactly one MXU matmul.
    """
    x_ref = refs[0]
    w_refs = refs[1:-1]
    out_ref = refs[-1]

    h = x_ref[...]                                               # [Bp, DinP]
    # hidden layers: matmul (bias fused) -> ReLU
    for w_ref in w_refs[:-1]:
        h = jnp.maximum(
            jnp.dot(h, w_ref[...], preferred_element_type=jnp.float32), 0.0)

    # fused heads: columns [0:A] = advantages, column A = value, rest = 0
    y = jnp.dot(h, w_refs[-1][...], preferred_element_type=jnp.float32)

    # global mean of advantages over the REAL batch rows / action columns only
    row = jax.lax.broadcasted_iota(jnp.int32, y.shape, 0)
    col = jax.lax.broadcasted_iota(jnp.int32, y.shape, 1)
    mask = (row < n_rows) & (col < n_actions)
    adv_mean = jnp.sum(jnp.where(mask, y, 0.0)) * (1.0 / float(n_rows * n_actions))

    val = y[:, n_actions:n_actions + 1]                          # [Bp, 1]

    # dueling combine, written as a lane-dense slab; wrapper slices [:B, :A]
    out_ref[...] = (y - adv_mean + val).astype(out_ref.dtype)


# ------------------------------------------------------------- param packer --
def pack_params(params, action_size):
    """Fuse biases into augmented, zero-padded, lane-aligned weights (done once).

    params = (w1, b1, w2, b2, ..., wa, ba, wv, bv) with w: [fan_in, fan_out],
    b: [1, fan_out].  Returns a tuple of augmented weight matrices; the last
    one is the fused advantage+value head [H_last+1 pad, A+1 pad].
    """
    hidden = params[:-4]
    wa, ba, wv, bv = params[-4:]
    n_hidden = len(hidden) // 2
    nout = action_size + 1

    packed = []
    for i in range(n_hidden):
        w, b = hidden[2 * i], hidden[2 * i + 1]
        fin, fout = w.shape
        # +1 reserves the carry-1 row/column even when dims are 128-aligned
        fin_p = _round_up(fin + 1, 128)
        fout_p = _round_up(fout + 1, 128)
        w_aug = jnp.zeros((fin_p, fout_p), jnp.float32)
        w_aug = w_aug.at[:fin, :fout].set(w)
        w_aug = w_aug.at[fin, :fout].set(b[0])      # bias row (picked by carry 1)
        w_aug = w_aug.at[fin, fout].set(1.0)        # propagate carry (relu(1)=1)
        packed.append(w_aug)

    h_last = wa.shape[0]
    h_last_p = _round_up(h_last + 1, 128)
    nout_p = _round_up(nout, 128)
    w_head = jnp.zeros((h_last_p, nout_p), jnp.float32)
    w_head = w_head.at[:h_last, :action_size].set(wa)
    w_head = w_head.at[:h_last, action_size].set(wv[:, 0])
    w_head = w_head.at[h_last, :action_size].set(ba[0])
    w_head = w_head.at[h_last, action_size].set(bv[0, 0])
    packed.append(w_head)

    return tuple(packed)


# ----------------------------------------------------------------- wrapper --
def _full_spec(shape):
    # One grid point; block == full array (allowed regardless of (8,128) rule).
    return pl.BlockSpec(shape, lambda *_: (0,) * len(shape))


@functools.partial(jax.jit, static_argnames=("action_size",))
def qnetwork_forward(x, packed_weights, action_size):
    batch, din = x.shape
    din_p = packed_weights[0].shape[0]
    nout_p = packed_weights[-1].shape[1]
    b_pad = max(8, _round_up(batch, 8))

    # pad the state batch to a full sublane tile; carry-1 column at index din
    x_p = jnp.zeros((b_pad, din_p), jnp.float32).at[:batch, :din].set(x)
    x_p = x_p.at[:, din].set(1.0)

    kernel = functools.partial(
        qnetwork_kernel, n_rows=batch, n_actions=action_size)

    flops = 2 * b_pad * sum(w.shape[0] * w.shape[1] for w in packed_weights)
    bytes_accessed = 4 * (x_p.size + sum(w.size for w in packed_weights)
                          + b_pad * nout_p)

    args = (x_p,) + tuple(packed_weights)
    y = pl.pallas_call(
        kernel,
        out_shape=jax.ShapeDtypeStruct((b_pad, nout_p), jnp.float32),
        in_specs=[_full_spec(a.shape) for a in args],
        out_specs=_full_spec((b_pad, nout_p)),
        cost_estimate=pl.CostEstimate(flops=flops, transcendentals=0,
                                      bytes_accessed=bytes_accessed),
    )(*args)

    return y[:batch, :action_size]


# ------------------------------------------------------------- param setup --
def init_params(key, state_size, action_size, num_frames, hidden_sizes_list):
    """Deterministic init mimicking PyTorch Linear default (U[-1/sqrt(fan_in), +])."""
    in_dim = state_size * (num_frames + 1) + num_frames
    dims = [in_dim] + list(hidden_sizes_list)

    def linear(k, fan_in, fan_out):
        kw, kb = jax.random.split(k)
        bound = 1.0 / jnp.sqrt(jnp.float32(fan_in))
        w = jax.random.uniform(kw, (fan_in, fan_out), jnp.float32, -bound, bound)
        b = jax.random.uniform(kb, (1, fan_out), jnp.float32, -bound, bound)
        return w, b

    keys = jax.random.split(key, len(hidden_sizes_list) + 2)
    params = []
    for i in range(len(hidden_sizes_list)):
        params.extend(linear(keys[i], dims[i], dims[i + 1]))
    params.extend(linear(keys[-2], dims[-1], action_size))   # fc_advantage
    params.extend(linear(keys[-1], dims[-1], 1))              # fc_state
    return tuple(params), in_dim


# plain-JAX reference (same math, unpadded) for a sanity check
def reference_forward(x, params):
    hidden = params[:-4]
    wa, ba, wv, bv = params[-4:]
    h = x
    for i in range(len(hidden) // 2):
        h = jnp.maximum(h @ hidden[2 * i] + hidden[2 * i + 1], 0.0)
    adv = h @ wa + ba
    val = h @ wv + bv
    return adv - adv.mean() + val


if __name__ == "__main__":
    # Small shapes consistent with the module's __init__:
    state_size = 8
    action_size = 4
    num_frames = 3
    hidden_sizes_list = [32, 32]
    batch = 2

    key = jax.random.PRNGKey(0)
    pkey, xkey = jax.random.split(key)
    params, in_dim = init_params(pkey, state_size, action_size,
                                 num_frames, hidden_sizes_list)

    x = jax.random.normal(xkey, (batch, in_dim), jnp.float32)   # [2, 35]

    packed = pack_params(params, action_size)
    out = qnetwork_forward(x, packed, action_size)
    jax.block_until_ready(out)

    ref = reference_forward(x, params)
    assert out.shape == (batch, action_size)
    assert jnp.allclose(out, ref, atol=1e-4, rtol=1e-5), "mismatch vs reference"

    print("KERNEL_OK")
</pallas_src>

<mosaic_0001>
module attributes {stable_mosaic.version = 11 : i64} {
  func.func @qnetwork_kernel(%arg0: memref<8x128xf32, #tpu.memory_space<vmem>>, %arg1: memref<128x128xf32, #tpu.memory_space<vmem>>, %arg2: memref<128x128xf32, #tpu.memory_space<vmem>>, %arg3: memref<128x128xf32, #tpu.memory_space<vmem>>, %arg4: memref<8x128xf32, #tpu.memory_space<vmem>>) attributes {dimension_semantics = [], scalar_prefetch = 0 : i64, scratch_operands = 0 : i64, tpu.core_type = #tpu.core_type<tc>} {
    %c0 = arith.constant 0 : index
    %c0_0 = arith.constant 0 : index
    %0 = vector.load %arg0[%c0, %c0_0] : memref<8x128xf32, #tpu.memory_space<vmem>>, vector<8x128xf32>
    %c0_1 = arith.constant 0 : index
    %c0_2 = arith.constant 0 : index
    %1 = vector.load %arg1[%c0_1, %c0_2] : memref<128x128xf32, #tpu.memory_space<vmem>>, vector<128x128xf32>
    %cst = arith.constant dense<0.000000e+00> : vector<8x128xf32>
    %2 = tpu.matmul %0, %1, %cst {dimension_numbers = #tpu.dot_dimension_numbers<[1], [0], [0], [1], [0, 0, 1, 1], [], []>} : vector<8x128xf32>, vector<128x128xf32>, vector<8x128xf32> -> vector<8x128xf32>
    %cst_3 = arith.constant 0.000000e+00 : f32
    %3 = vector.broadcast %cst_3 : f32 to vector<8x128xf32>
    %4 = arith.maximumf %2, %3 : vector<8x128xf32>
    %c0_4 = arith.constant 0 : index
    %c0_5 = arith.constant 0 : index
    %5 = vector.load %arg2[%c0_4, %c0_5] : memref<128x128xf32, #tpu.memory_space<vmem>>, vector<128x128xf32>
    %cst_6 = arith.constant dense<0.000000e+00> : vector<8x128xf32>
    %6 = tpu.matmul %4, %5, %cst_6 {dimension_numbers = #tpu.dot_dimension_numbers<[1], [0], [0], [1], [0, 0, 1, 1], [], []>} : vector<8x128xf32>, vector<128x128xf32>, vector<8x128xf32> -> vector<8x128xf32>
    %cst_7 = arith.constant 0.000000e+00 : f32
    %7 = vector.broadcast %cst_7 : f32 to vector<8x128xf32>
    %8 = arith.maximumf %6, %7 : vector<8x128xf32>
    %c0_8 = arith.constant 0 : index
    %c0_9 = arith.constant 0 : index
    %9 = vector.load %arg3[%c0_8, %c0_9] : memref<128x128xf32, #tpu.memory_space<vmem>>, vector<128x128xf32>
    %cst_10 = arith.constant dense<0.000000e+00> : vector<8x128xf32>
    %10 = tpu.matmul %8, %9, %cst_10 {dimension_numbers = #tpu.dot_dimension_numbers<[1], [0], [0], [1], [0, 0, 1, 1], [], []>} : vector<8x128xf32>, vector<128x128xf32>, vector<8x128xf32> -> vector<8x128xf32>
    %11 = tpu.iota {dimensions = array<i32: 0>} : vector<8x128xi32>
    %12 = tpu.iota {dimensions = array<i32: 1>} : vector<8x128xi32>
    %c2_i32 = arith.constant 2 : i32
    %13 = vector.broadcast %c2_i32 : i32 to vector<8x128xi32>
    %14 = arith.cmpi slt, %11, %13 : vector<8x128xi32>
    %c4_i32 = arith.constant 4 : i32
    %15 = vector.broadcast %c4_i32 : i32 to vector<8x128xi32>
    %16 = arith.cmpi slt, %12, %15 : vector<8x128xi32>
    %17 = arith.andi %14, %16 : vector<8x128xi1>
    %cst_11 = arith.constant 0.000000e+00 : f32
    %18 = vector.broadcast %cst_11 : f32 to vector<8x128xf32>
    %19 = arith.select %17, %10, %18 : vector<8x128xi1>, vector<8x128xf32>
    %20 = vector.shape_cast %19 : vector<8x128xf32> to vector<1x8x128xf32>
    %cst_12 = arith.constant dense<0.000000e+00> : vector<1xf32>
    %21 = vector.multi_reduction <add>, %20, %cst_12 [1, 2] : vector<1x8x128xf32> to vector<1xf32>
    %22 = vector.shape_cast %21 : vector<1xf32> to vector<1x1x1xf32>
    %23 = vector.extract %22[0, 0, 0] : f32 from vector<1x1x1xf32>
    %cst_13 = arith.constant 1.250000e-01 : f32
    %24 = arith.mulf %23, %cst_13 : f32
    %25 = vector.extract_strided_slice %10 {offsets = [0, 4], sizes = [8, 1], strides = [1, 1]} : vector<8x128xf32> to vector<8x1xf32>
    %26 = vector.broadcast %24 : f32 to vector<8x128xf32>
    %27 = arith.subf %10, %26 : vector<8x128xf32>
    %28 = vector.broadcast %25 : vector<8x1xf32> to vector<8x128xf32>
    %29 = arith.addf %27, %28 : vector<8x128xf32>
    %c0_14 = arith.constant 0 : index
    %c0_15 = arith.constant 0 : index
    %30 = vector.load %arg4[%c0_14, %c0_15] : memref<8x128xf32, #tpu.memory_space<vmem>>, vector<8x128xf32>
    tpu.vector_store %arg4[%c0_14, %c0_15], %29 {strides = array<i32>} : memref<8x128xf32, #tpu.memory_space<vmem>>, vector<8x128xf32>,
    return
  }
}

</mosaic_0001>

<bundles_post_ra>
// kernel: qnetwork_forward.1
= control target key start
LH: loop header
LB: loop body
LE: loop exit
PB: predicated region body
PF: predicated region fallthrough
CT: control target
= control target key end

     0   :  { %9 = vsyncpa [#allocation3], 0  ;;  %s685_s0 = inlined_call_operand.vmem [shape: f32[8,128], index: 0, kind: input, shape index: {}]   ;;  %s686_s1 = inlined_call_operand.hbm [shape: f32[128,128], index: 1, kind: input, shape index: {}]   ;;  %s687_s2 = inlined_call_operand.hbm [shape: f32[128,128], index: 2, kind: input, shape index: {}]   ;;  %s688_s3 = inlined_call_operand.hbm [shape: f32[128,128], index: 3, kind: input, shape index: {}]   ;;  %s689_s4 = inlined_call_operand.vmem [shape: f32[8,128], index: 4, kind: output, shape index: {}]  }
   0x1   :  { %10 = vsyncpa [#allocation5], 0  ;;  %s583_s15 = smov [#allocation4]   ;;  %s584_s17 = smov [#allocation2]  }
   0x2   :  { %s30_s16 = sshll.u32 %s583_s15, 4  ;;  %s18_s18 = sshll.u32 %s584_s17, 4  ;;  %s31_s16 = int_to_ptr.vmem [resolvable:$true] %s30_s16  ;;  %s19_s18 = int_to_ptr.vmem [resolvable:$true] %s18_s18 }
   0x3   :  { %s527_s19 = scalar_lea.vmem %s31_s16, 2048  ;;  %p532_p1 = scmp.lt.s32.totalorder %s31_s16, %s31_s16 }
   0x4   :  { %p528_p0 = scmp.ne.s32.totalorder %s31_s16, %s527_s19  ;;  %p533_p2 = scmp.lt.s32.totalorder %s527_s19, %s527_s19 }
   0x6   :  { %p534_p3 = por %p533_p2, %p532_p1 }
   0x8   :  { %p535_p4 = pnand %p534_p3, %p528_p0 }
   0xa   :  { %538 = shalt.err (!%p535_p4)
}
   0xb   :  { %s585_s20 = smov 128   ;;  %s586_s21 = smov 8  }
   0xc   :  { %36 = dma.hbm_to_vmem [thread:$0]  %s687_s2, 2048, %s31_s16, [#allocation5], %s585_s20, %s585_s20, %s586_s21  }
   0xd   :  { %s547_s24 = scalar_lea.vmem %s19_s18, 2048  ;;  %p552_p6 = scmp.lt.s32.totalorder %s19_s18, %s19_s18 }
   0xe   :  { %p548_p5 = scmp.ne.s32.totalorder %s19_s18, %s547_s24  ;;  %p553_p7 = scmp.lt.s32.totalorder %s547_s24, %s547_s24 }
  0x10   :  { %p554_p8 = por %p553_p7, %p552_p6 }
  0x12   :  { %p555_p9 = pnand %p554_p8, %p548_p5 }
  0x14   :  { %558 = shalt.err (!%p555_p9)
}
  0x15   :  { %24 = dma.hbm_to_vmem [thread:$0]  %s686_s1, 2048, %s19_s18, [#allocation3], %s585_s20, %s585_s20, %s586_s21  }
  0x16   :  { %s587_s27 = smov [#allocation6]  }
  0x17   :  { %s42_s28 = sshll.u32 %s587_s27, 4  ;;  %s43_s28 = int_to_ptr.vmem [resolvable:$true] %s42_s28 }
  0x18   :  { %s567_s29 = scalar_lea.vmem %s43_s28, 2048  ;;  %p572_p11 = scmp.lt.s32.totalorder %s43_s28, %s43_s28 }
  0x19   :  { %p568_p10 = scmp.ne.s32.totalorder %s43_s28, %s567_s29  ;;  %p573_p12 = scmp.lt.s32.totalorder %s567_s29, %s567_s29 }
  0x1b   :  { %p574_p13 = por %p573_p12, %p572_p11 }
  0x1d   :  { %p575_p0 = pnand %p574_p13, %p568_p10 }
  0x1f   :  { %578 = shalt.err (!%p575_p0)
}
  0x20   :  { %48 = dma.hbm_to_vmem [thread:$0]  %s688_s3, 2048, %s43_s28, [#allocation5], %s585_s20, %s585_s20, %s586_s21  }
  0x21   :  { %579 = dma.done.wait [#allocation3], 2048  }
  0x22   :  { %580 = vsyncadd [#allocation3], 4294965248 }
  0x23   :  { %581 = dma.done.wait [#allocation5], 4096  }
  0x24   :  { %582 = vsyncadd [#allocation5], 4294963200  ;;  %v588_v0 = vmov 0.0   ;;  %vm589_vm0 = vmmov 0   ;;  %v74_v1 = vld [vmem:[#allocation2 + $0x78] sm:$0xff]  ;;  %v73_v2 = vld [vmem:[#allocation2 + $0x70] sm:$0xff]  ;;  %v319_v57 = vlaneseq }
  0x25   :  { %403 = vmatprep.subr.mxu0 %v588_v0  ;;  %435 = vmatprep.mubr.msk.f32.mxu0 %vm589_vm0, %v588_v0  ;;  %v72_v3 = vld [vmem:[#allocation2 + $0x68] sm:$0xff]  ;;  %v71_v4 = vld [vmem:[#allocation2 + $0x60] sm:$0xff]  ;;  %v161_v5 = vld [vmem:[#allocation4 + $0x78] sm:$0xff]  ;;  %v590_v56 = vmov 4  }
  0x26   :  { %438 = vmatprep.subr.mxu1 %v588_v0  ;;  %470 = vmatprep.mubr.msk.f32.mxu1 %vm589_vm0, %v588_v0  ;;  %v70_v6 = vld [vmem:[#allocation2 + $0x58] sm:$0xff]  ;;  %v160_v7 = vld [vmem:[#allocation4 + $0x70] sm:$0xff]  ;;  %v159_v8 = vld [vmem:[#allocation4 + $0x68] sm:$0xff]  ;;  %v320_v58 = vshrl.u32 %v319_v57, 7  ;;  %v322_v59 = vand.u32 127, %v319_v57 }
  0x27   :  { %404 = vmatpush3.msra.mxu0 %v74_v1  ;;  %439 = vmatpush3.msra.mxu1 %v161_v5  ;;  %v69_v9 = vld [vmem:[#allocation2 + $0x50] sm:$0xff]  ;;  %v158_v10 = vld [vmem:[#allocation4 + $0x60] sm:$0xff]  ;;  %v68_v11 = vld [vmem:[#allocation2 + $0x48] sm:$0xff] }
  0x28   :  { %405 = vmatprep.subr.mxu0 %v588_v0  ;;  %440 = vmatprep.subr.mxu1 %v588_v0  ;;  %v157_v12 = vld [vmem:[#allocation4 + $0x58] sm:$0xff]  ;;  %v67_v13 = vld [vmem:[#allocation2 + $0x40] sm:$0xff]  ;;  %v156_v14 = vld [vmem:[#allocation4 + $0x50] sm:$0xff]  ;;  %vm323_vm1 = vcmp.lt.s32.totalorder %v320_v58, 2  ;;  %vm324_vm2 = vcmp.lt.s32.totalorder %v322_v59, 4 }
  0x29   :  { %406 = vmatpush3.msra.mxu0 %v73_v2  ;;  %441 = vmatpush3.msra.mxu1 %v160_v7  ;;  %v66_v15 = vld [vmem:[#allocation2 + $0x38] sm:$0xff]  ;;  %v155_v16 = vld [vmem:[#allocation4 + $0x48] sm:$0xff]  ;;  %v65_v17 = vld [vmem:[#allocation2 + $0x30] sm:$0xff] }
  0x2a   :  { %407 = vmatprep.subr.mxu0 %v588_v0  ;;  %442 = vmatprep.subr.mxu1 %v588_v0  ;;  %v154_v18 = vld [vmem:[#allocation4 + $0x40] sm:$0xff]  ;;  %v64_v19 = vld [vmem:[#allocation2 + $0x28] sm:$0xff]  ;;  %v153_v20 = vld [vmem:[#allocation4 + $0x38] sm:$0xff] }
  0x2b   :  { %408 = vmatpush3.msra.mxu0 %v72_v3  ;;  %443 = vmatpush3.msra.mxu1 %v159_v8  ;;  %v63_v21 = vld [vmem:[#allocation2 + $0x20] sm:$0xff]  ;;  %v152_v22 = vld [vmem:[#allocation4 + $0x30] sm:$0xff]  ;;  %v62_v23 = vld [vmem:[#allocation2 + $0x18] sm:$0xff] }
  0x2c   :  { %409 = vmatprep.subr.mxu0 %v588_v0  ;;  %444 = vmatprep.subr.mxu1 %v588_v0  ;;  %v151_v24 = vld [vmem:[#allocation4 + $0x28] sm:$0xff]  ;;  %v61_v25 = vld [vmem:[#allocation2 + $0x10] sm:$0xff]  ;;  %v150_v26 = vld [vmem:[#allocation4 + $0x20] sm:$0xff] }
  0x2d   :  { %410 = vmatpush3.msra.mxu0 %v71_v4  ;;  %445 = vmatpush3.msra.mxu1 %v158_v10  ;;  %v60_v27 = vld [vmem:[#allocation2 + $0x8] sm:$0xff]  ;;  %v149_v28 = vld [vmem:[#allocation4 + $0x18] sm:$0xff]  ;;  %v59_v29 = vld [vmem:[#allocation2] sm:$0xff] }
  0x2e   :  { %411 = vmatprep.subr.mxu0 %v588_v0  ;;  %446 = vmatprep.subr.mxu1 %v588_v0  ;;  %v58_v30 = vld [vmem:[%s685_s0] sm:$0xff]  ;;  %v148_v31 = vld [vmem:[#allocation4 + $0x10] sm:$0xff]  ;;  %v147_v32 = vld [vmem:[#allocation4 + $0x8] sm:$0xff] }
  0x2f   :  { %412 = vmatpush3.msra.mxu0 %v70_v6  ;;  %447 = vmatpush3.msra.mxu1 %v157_v12  ;;  %v146_v33 = vld [vmem:[#allocation4] sm:$0xff]  ;;  %v248_v34 = vld [vmem:[#allocation6 + $0x78] sm:$0xff]  ;;  %v247_v35 = vld [vmem:[#allocation6 + $0x70] sm:$0xff] }
  0x30   :  { %413 = vmatprep.subr.mxu0 %v588_v0  ;;  %448 = vmatprep.subr.mxu1 %v588_v0  ;;  %v246_v36 = vld [vmem:[#allocation6 + $0x68] sm:$0xff]  ;;  %v245_v37 = vld [vmem:[#allocation6 + $0x60] sm:$0xff]  ;;  %v244_v38 = vld [vmem:[#allocation6 + $0x58] sm:$0xff] }
  0x31   :  { %414 = vmatpush3.msra.mxu0 %v69_v9  ;;  %449 = vmatpush3.msra.mxu1 %v156_v14  ;;  %v243_v39 = vld [vmem:[#allocation6 + $0x50] sm:$0xff]  ;;  %v242_v40 = vld [vmem:[#allocation6 + $0x48] sm:$0xff]  ;;  %v241_v41 = vld [vmem:[#allocation6 + $0x40] sm:$0xff] }
  0x32   :  { %415 = vmatprep.subr.mxu0 %v588_v0  ;;  %450 = vmatprep.subr.mxu1 %v588_v0  ;;  %v240_v42 = vld [vmem:[#allocation6 + $0x38] sm:$0xff]  ;;  %v239_v43 = vld [vmem:[#allocation6 + $0x30] sm:$0xff]  ;;  %v238_v44 = vld [vmem:[#allocation6 + $0x28] sm:$0xff] }
  0x33   :  { %416 = vmatpush3.msra.mxu0 %v68_v11  ;;  %451 = vmatpush3.msra.mxu1 %v155_v16  ;;  %v237_v45 = vld [vmem:[#allocation6 + $0x20] sm:$0xff]  ;;  %v236_v46 = vld [vmem:[#allocation6 + $0x18] sm:$0xff]  ;;  %v235_v47 = vld [vmem:[#allocation6 + $0x10] sm:$0xff] }
  0x34   :  { %417 = vmatprep.subr.mxu0 %v588_v0  ;;  %452 = vmatprep.subr.mxu1 %v588_v0  ;;  %v234_v51 = vld [vmem:[#allocation6 + $0x8] sm:$0xff]  ;;  %v233_v52 = vld [vmem:[#allocation6] sm:$0xff]  ;;  %vm325_vm3 = vmand %vm323_vm1, %vm324_vm2 }
  0x35   :  { %418 = vmatpush3.msra.mxu0 %v67_v13  ;;  %453 = vmatpush3.msra.mxu1 %v154_v18 }
  0x36   :  { %419 = vmatprep.subr.mxu0 %v588_v0  ;;  %454 = vmatprep.subr.mxu1 %v588_v0 }
  0x37   :  { %420 = vmatpush3.msra.mxu0 %v66_v15  ;;  %455 = vmatpush3.msra.mxu1 %v153_v20 }
  0x38   :  { %421 = vmatprep.subr.mxu0 %v588_v0  ;;  %456 = vmatprep.subr.mxu1 %v588_v0 }
  0x39   :  { %422 = vmatpush3.msra.mxu0 %v65_v17  ;;  %457 = vmatpush3.msra.mxu1 %v152_v22 }
  0x3a   :  { %423 = vmatprep.subr.mxu0 %v588_v0  ;;  %458 = vmatprep.subr.mxu1 %v588_v0 }
  0x3b   :  { %424 = vmatpush3.msra.mxu0 %v64_v19  ;;  %459 = vmatpush3.msra.mxu1 %v151_v24 }
  0x3c   :  { %425 = vmatprep.subr.mxu0 %v588_v0  ;;  %460 = vmatprep.subr.mxu1 %v588_v0 }
  0x3d   :  { %426 = vmatpush3.msra.mxu0 %v63_v21  ;;  %461 = vmatpush3.msra.mxu1 %v150_v26 }
  0x3e   :  { %427 = vmatprep.subr.mxu0 %v588_v0  ;;  %462 = vmatprep.subr.mxu1 %v588_v0 }
  0x3f   :  { %428 = vmatpush3.msra.mxu0 %v62_v23  ;;  %463 = vmatpush3.msra.mxu1 %v149_v28 }
  0x40   :  { %429 = vmatprep.subr.mxu0 %v588_v0  ;;  %464 = vmatprep.subr.mxu1 %v588_v0 }
  0x41   :  { %430 = vmatpush3.msra.mxu0 %v61_v25  ;;  %465 = vmatpush3.msra.mxu1 %v148_v31 }
  0x42   :  { %431 = vmatprep.subr.mxu0 %v588_v0  ;;  %466 = vmatprep.subr.mxu1 %v588_v0 }
  0x43   :  { %432 = vmatpush3.msra.mxu0 %v60_v27  ;;  %467 = vmatpush3.msra.mxu1 %v147_v32 }
  0x44   :  { %433 = vmatprep.subr.mxu0 %v588_v0  ;;  %468 = vmatprep.subr.mxu1 %v588_v0 }
  0x45   :  { %434 = vmatpush3.msra.mxu0 %v59_v29  ;;  %469 = vmatpush3.msra.mxu1 %v146_v33 }
  0x46   :  { %436 = vmatmul.mubr.f32.vlgmr.msra.gmra.mxu0 %v58_v30  ;;  %473 = vmatprep.subr.mxu0 %v588_v0 }
  0x47   :  { %505 = vmatprep.mubr.msk.f32.mxu0 %vm589_vm0, %v588_v0  ;;  %474 = vmatpush3.msra.mxu0 %v248_v34 }
  0x48   :  { %475 = vmatprep.subr.mxu0 %v588_v0  ;;  %518 = vset.pattern.permute.xlu0 %v590_v56 }
  0x49   :  { %476 = vmatpush3.msra.mxu0 %v247_v35 }
  0x4a   :  { %477 = vmatprep.subr.mxu0 %v588_v0 }
  0x4b   :  { %478 = vmatpush3.msra.mxu0 %v246_v36 }
  0x4c   :  { %479 = vmatprep.subr.mxu0 %v588_v0 }
  0x4d   :  { %480 = vmatpush3.msra.mxu0 %v245_v37 }
  0x4e   :  { %481 = vmatprep.subr.mxu0 %v588_v0 }
  0x4f   :  { %482 = vmatpush3.msra.mxu0 %v244_v38 }
  0x50   :  { %483 = vmatprep.subr.mxu0 %v588_v0 }
  0x51   :  { %484 = vmatpush3.msra.mxu0 %v243_v39 }
  0x52   :  { %485 = vmatprep.subr.mxu0 %v588_v0 }
  0x53   :  { %486 = vmatpush3.msra.mxu0 %v242_v40 }
  0x54   :  { %487 = vmatprep.subr.mxu0 %v588_v0 }
  0x55   :  { %488 = vmatpush3.msra.mxu0 %v241_v41 }
  0x56   :  { %489 = vmatprep.subr.mxu0 %v588_v0 }
  0x57   :  { %490 = vmatpush3.msra.mxu0 %v240_v42 }
  0x58   :  { %491 = vmatprep.subr.mxu0 %v588_v0 }
  0x59   :  { %492 = vmatpush3.msra.mxu0 %v239_v43 }
  0x5a   :  { %493 = vmatprep.subr.mxu0 %v588_v0 }
  0x5b   :  { %494 = vmatpush3.msra.mxu0 %v238_v44 }
  0x5c   :  { %495 = vmatprep.subr.mxu0 %v588_v0 }
  0x5d   :  { %496 = vmatpush3.msra.mxu0 %v237_v45 }
  0x5e   :  { %497 = vmatprep.subr.mxu0 %v588_v0 }
  0x5f   :  { %498 = vmatpush3.msra.mxu0 %v236_v46 }
  0x60   :  { %499 = vmatprep.subr.mxu0 %v588_v0 }
  0x61   :  { %500 = vmatpush3.msra.mxu0 %v235_v47 }
  0x62   :  { %501 = vmatprep.subr.mxu0 %v588_v0 }
  0x63   :  { %502 = vmatpush3.msra.mxu0 %v234_v51 }
  0x64   :  { %503 = vmatprep.subr.mxu0 %v588_v0 }
  0x65   :  { %504 = vmatpush3.msra.mxu0 %v233_v52 }
 0x106   :  { %v141_v48 = vpop.f32.mrf.mxu0 }
 0x107   :  { %v145_v49 = vmax.f32 %v141_v48, 0.0 }
 0x108   :  { %v437_v50 = vpop.f32.mrf.mxu0 }
 0x109   :  { %471 = vmatmul.mubr.f32.vlgmr.msra.gmra.mxu1 %v145_v49 }
 0x1c9   :  { %v228_v53 = vpop.f32.mrf.mxu1 }
 0x1ca   :  { %v232_v54 = vmax.f32 %v228_v53, 0.0 }
 0x1cb   :  { %v472_v55 = vpop.f32.mrf.mxu1 }
 0x1cc   :  { %506 = vmatmul.mubr.f32.vlgmr.msra.gmra.mxu0 %v232_v54 }
 0x28c   :  { %v315_v60 = vpop.f32.mrf.mxu0 }
 0x28d   :  { %v326_v61 = vsel %vm325_vm3, %v315_v60, 0.0 }
 0x28e   :  { %327 = vadd.xlane.f32.xlu0 %v326_v61  ;;  %v507_v62 = vpop.f32.mrf.mxu0 }
 0x2a4   :  { %341 = vperm.xlu0 %518, %v315_v60  }
 0x317   :  { %v328_v63 = vpop.xlane.xlu0 %327 }
 0x318   :  { %v329_v0 = vrot.slane %v328_v63, 4 }
 0x31a   :  { %v330_v1 = vadd.f32 %v329_v0, %v328_v63 }
 0x31c   :  { %v331_v2 = vrot.slane %v330_v1, 2 }
 0x31e   :  { %v332_v3 = vadd.f32 %v331_v2, %v330_v1 }
 0x31f   :  { %v342_v8 = vpop.permute.xlu0 %341 }
 0x320   :  { %v333_v4 = vrot.slane %v332_v3, 1 }
 0x322   :  { %v334_v5 = vadd.f32 %v333_v4, %v332_v3 }
 0x324   :  { %508 = vpush %v334_v5 }
 0x355   :  { %s509_s0 = spop %508 }
 0x356   :  { %s336_s5 = smul.f32 0.125, %s509_s0 }
 0x358   :  { %v337_v6 = vstv %s336_s5 }
 0x359   :  { %v338_v7 = vsub.f32 %v315_v60, %v337_v6 }
 0x35b   :  { %v344_v9 = vadd.f32 %v342_v8, %v338_v7 }
 0x35d   :  { %345 = vst [vmem:[%s689_s4] sm:$0xff] %v344_v9 }
 0x35e   :  { %350 = vsyncpa [#allocation3], 1 }
 0x35f   :  { %351 = vsyncpa [#allocation5], 1 }

</bundles_post_ra>
